<compile_context>
chip_gen: v7x
topology: tpu7x:2x2x1
jax: 0.10.0
libtpu: 0.0.40
codegen_flags: <defaults>
</compile_context>

<pallas_src>
import functools

import jax
import jax.numpy as jnp
from jax import lax
from jax.experimental import pallas as pl
from jax.experimental.pallas import tpu as pltpu


_LANE = 128
_SUBLANE = 8
# Single fused pass (whole batch resident per channel tile) is used only while the
# combined in+out block stays under this budget; beyond it we switch to the
# batch-tiled two-phase pipeline.
_SINGLE_PASS_BLOCK_BYTES = 8 << 20
# Target size of one x block on the two-phase path.
_TWO_PASS_X_BLOCK_BYTES = 2 << 20


def _round_down(x, m):
    return (x // m) * m


def _channel_tile(d):
    """Lane-dense channel tile; >= 2 blocks whenever d allows (v7x has 2 TCs)."""
    if d % _LANE != 0 or d <= _LANE:
        return d  # full extent is always a legal block dim (masked stores if d < 128)
    half = _round_down(d // 2, _LANE)
    return max(_LANE, min(512, half))


def _batch_tile(n, td, in_isz):
    """Batch tile for the two-phase path: ~2 MiB per x block, multiple of 8."""
    tn = _round_down(max(_TWO_PASS_X_BLOCK_BYTES // (td * in_isz), _SUBLANE), _SUBLANE)
    return n if tn >= n else tn


def _clamp_vmem(need_bytes):
    # Blocks are sized so `need` stays well under v7x's 64 MiB physical VMEM; raise
    # above the 16/32 MiB scoped defaults so the compiler has room, cap with headroom.
    return int(min(max(need_bytes, 32 << 20), 48 << 20))


def _buffered_x_spec(block_shape, index_map, depth=3):
    """BlockSpec with deeper pipelining for the streamed x input (fallback: default)."""
    buffered = getattr(pl, "Buffered", None)
    if buffered is not None:
        try:
            return pl.BlockSpec(block_shape, index_map, pipeline_mode=buffered(depth))
        except TypeError:
            pass
    return pl.BlockSpec(block_shape, index_map)


# ------------------------------- Pallas kernels -------------------------------

def _bn_fused_kernel(x_ref, g_ref, b_ref, o_ref, *, eps):
    """Single-pass train-mode BN for one channel tile with the full batch resident."""
    x = x_ref[...].astype(jnp.float32)                   # cast in-kernel (bf16 -> f32)
    mean = jnp.mean(x, axis=0, keepdims=True)            # (1, TD) per-channel mean
    xc = x - mean
    var = jnp.mean(xc * xc, axis=0, keepdims=True)       # biased variance
    scale = lax.rsqrt(var + eps) * g_ref[...]            # EUP rsqrt
    o_ref[...] = (xc * scale + b_ref[...]).astype(o_ref.dtype)


def _bn_two_phase_kernel(x_ref, g_ref, b_ref, o_ref,
                         sum_ref, sumsq_ref, scale_ref, shift_ref,
                         *, eps, n_total, tn, mask_rows):
    """Batch-tiled BN.  Grid = (channel_blocks, 2 phases, batch_blocks).

    Phase 0 accumulates per-channel sum / sum-of-squares (f32 scratch, single
    traversal of each tile).  Phase 1 finalizes scale/shift at its first batch
    tile and normalizes every batch tile (re-reading x).
    """
    phase = pl.program_id(1)
    nb = pl.program_id(2)

    @pl.when(jnp.logical_and(phase == 0, nb == 0))
    def _init():
        sum_ref[...] = jnp.zeros_like(sum_ref)
        sumsq_ref[...] = jnp.zeros_like(sumsq_ref)

    @pl.when(phase == 0)
    def _accumulate():
        x = x_ref[...].astype(jnp.float32)
        if mask_rows:  # trailing partial batch tile: zero out-of-range rows
            rows = nb * tn + lax.broadcasted_iota(jnp.int32, x.shape, 0)
            x = jnp.where(rows < n_total, x, 0.0)
        sum_ref[...] += jnp.sum(x, axis=0, keepdims=True)
        sumsq_ref[...] += jnp.sum(x * x, axis=0, keepdims=True)

    @pl.when(jnp.logical_and(phase == 1, nb == 0))
    def _finalize_stats():
        inv_n = 1.0 / n_total
        mean = sum_ref[...] * inv_n
        # f32 accumulators; clamp guards the E[x^2]-mean^2 cancellation at tiny var.
        var = jnp.maximum(sumsq_ref[...] * inv_n - mean * mean, 0.0)
        scale = lax.rsqrt(var + eps) * g_ref[...]
        scale_ref[...] = scale
        shift_ref[...] = b_ref[...] - mean * scale

    @pl.when(phase == 1)
    def _normalize():
        x = x_ref[...].astype(jnp.float32)
        o_ref[...] = (x * scale_ref[...] + shift_ref[...]).astype(o_ref.dtype)


# --------------------------------- builders -----------------------------------

@functools.lru_cache(maxsize=None)
def _build_bn_call(n, d, in_dtype_name, eps, force_batch_tile):
    in_dtype = jnp.dtype(in_dtype_name)
    out_dtype = in_dtype
    in_isz = in_dtype.itemsize
    out_isz = out_dtype.itemsize

    td = _channel_tile(d)
    d_blocks = pl.cdiv(d, td)

    single_block_bytes = n * td * (in_isz + out_isz)
    use_single_pass = (force_batch_tile is None
                       and single_block_bytes <= _SINGLE_PASS_BLOCK_BYTES)

    if use_single_pass:
        x_block = n * td * in_isz
        o_block = n * td * out_isz
        vmem_need = 3 * x_block + 2 * o_block + 8 * td * 4 + (2 << 20)
        fn = pl.pallas_call(
            functools.partial(_bn_fused_kernel, eps=eps),
            out_shape=jax.ShapeDtypeStruct((n, d), out_dtype),
            grid_spec=pltpu.PrefetchScalarGridSpec(
                num_scalar_prefetch=0,
                grid=(d_blocks,),
                in_specs=[
                    pl.BlockSpec((n, td), lambda j: (0, j)),   # x (full batch)
                    pl.BlockSpec((1, td), lambda j: (0, j)),   # gamma
                    pl.BlockSpec((1, td), lambda j: (0, j)),   # beta
                ],
                out_specs=pl.BlockSpec((n, td), lambda j: (0, j)),
            ),
            compiler_params=pltpu.CompilerParams(
                dimension_semantics=("parallel",),
                vmem_limit_bytes=_clamp_vmem(vmem_need)),
            cost_estimate=pl.CostEstimate(
                flops=7 * n * d,
                transcendentals=d,
                bytes_accessed=n * d * (in_isz + out_isz) + 2 * d * 4),
        )
        return jax.jit(fn)

    # Batch-tiled two-phase path.
    tn = int(force_batch_tile) if force_batch_tile is not None else _batch_tile(n, td, in_isz)
    n_blocks = pl.cdiv(n, tn)
    mask_rows = (n % tn) != 0

    x_block = tn * td * in_isz
    o_block = tn * td * out_isz
    vmem_need = 3 * x_block + 2 * o_block + 8 * td * 4 + 4 * td * 4 + (2 << 20)

    kernel = functools.partial(_bn_two_phase_kernel, eps=eps, n_total=n,
                               tn=tn, mask_rows=mask_rows)
    fn = pl.pallas_call(
        kernel,
        out_shape=jax.ShapeDtypeStruct((n, d), out_dtype),
        grid_spec=pltpu.PrefetchScalarGridSpec(
            num_scalar_prefetch=0,
            grid=(d_blocks, 2, n_blocks),
            in_specs=[
                _buffered_x_spec((tn, td), lambda j, p, nb: (nb, j)),
                pl.BlockSpec((1, td), lambda j, p, nb: (0, j)),
                pl.BlockSpec((1, td), lambda j, p, nb: (0, j)),
            ],
            # During the stats phase (p == 0) every step maps to output block (0, j):
            # the block index never changes, so nothing is written back until phase 1
            # overwrites the buffer with normalized data.
            out_specs=pl.BlockSpec((tn, td), lambda j, p, nb: (nb * p, j)),
            scratch_shapes=[pltpu.VMEM((1, td), jnp.float32)] * 4,  # sum, sumsq, scale, shift
        ),
        compiler_params=pltpu.CompilerParams(
            dimension_semantics=("parallel", "arbitrary", "arbitrary"),
            vmem_limit_bytes=_clamp_vmem(vmem_need)),
        cost_estimate=pl.CostEstimate(
            flops=9 * n * d,
            transcendentals=d,
            bytes_accessed=n * d * (2 * in_isz + out_isz) + 2 * d * 4),
    )
    return jax.jit(fn)


def linear_batch_norm(x, gamma, beta, *, dim, eps=1e-5, _force_batch_tile=None):
    """Forward of LinearBatchNorm(dim): flatten to (-1, dim), train-mode BN, (-1, dim) out."""
    x2 = x.reshape(-1, dim)                               # == view(-1, dim, 1, 1) collapse
    n, d = x2.shape
    g = gamma.reshape(1, d).astype(jnp.float32)
    b = beta.reshape(1, d).astype(jnp.float32)
    call = _build_bn_call(n, d, jnp.dtype(x2.dtype).name, float(eps),
                          None if _force_batch_tile is None else int(_force_batch_tile))
    return call(x2, g, b)


# ------------------------------------ main ------------------------------------

def _ref_linear_batch_norm(x, g, b, eps=1e-5):
    x = x.astype(jnp.float32)
    m = jnp.mean(x, axis=0, keepdims=True)
    v = jnp.mean((x - m) ** 2, axis=0, keepdims=True)
    return (x - m) * lax.rsqrt(v + eps) * g.reshape(1, -1) + b.reshape(1, -1)


if __name__ == "__main__":
    key = jax.random.PRNGKey(0)
    k1, k2, k3, k4, k5, k6 = jax.random.split(key, 6)

    # Case 1: tiny f32 input — fused single-pass path (d < 128 -> full-extent tile).
    N, DIM = 8, 32
    x = jax.random.normal(k1, (N, DIM), jnp.float32)
    gamma = jnp.ones((DIM,), jnp.float32)   # nn.BatchNorm2d affine init (weight=1)
    beta = jnp.zeros((DIM,), jnp.float32)   # bias=0
    y = jax.block_until_ready(linear_batch_norm(x, gamma, beta, dim=DIM))
    assert y.shape == (N, DIM), y.shape
    assert y.dtype == jnp.float32
    assert bool(jnp.all(jnp.isfinite(y)))
    assert bool(jnp.allclose(y, _ref_linear_batch_norm(x, gamma, beta),
                             atol=1e-4, rtol=1e-4))

    # Case 2: bf16 input, tiled channel axis (2 parallel blocks), f32 stats in-kernel,
    # bf16 output (no wrapper-side dtype round trip).
    N2, DIM2 = 16, 256
    x2 = jax.random.normal(k2, (N2, DIM2), jnp.float32).astype(jnp.bfloat16)
    g2 = 1.0 + 0.1 * jax.random.normal(k3, (DIM2,), jnp.float32)
    b2 = 0.1 * jax.random.normal(k4, (DIM2,), jnp.float32)
    y2 = jax.block_until_ready(linear_batch_norm(x2, g2, b2, dim=DIM2))
    assert y2.shape == (N2, DIM2), y2.shape
    assert y2.dtype == jnp.bfloat16
    assert bool(jnp.allclose(y2.astype(jnp.float32),
                             _ref_linear_batch_norm(x2, g2, b2),
                             atol=3e-2, rtol=3e-2))

    # Case 3: force the batch-tiled two-phase path (stats accumulate + normalize),
    # including a partial trailing batch tile (56 % 16 != 0), still at small shape.
    N3, DIM3 = 56, 256
    x3 = jax.random.normal(k5, (N3, DIM3), jnp.float32)
    g3 = 1.0 + 0.1 * jax.random.normal(k6, (DIM3,), jnp.float32)
    b3 = 0.05 * jnp.ones((DIM3,), jnp.float32)
    y3 = jax.block_until_ready(
        linear_batch_norm(x3, g3, b3, dim=DIM3, _force_batch_tile=16))
    assert y3.shape == (N3, DIM3), y3.shape
    assert bool(jnp.allclose(y3, _ref_linear_batch_norm(x3, g3, b3),
                             atol=1e-4, rtol=1e-4))

    print("KERNEL_OK")
</pallas_src>

<mosaic_0001>
module attributes {stable_mosaic.version = 11 : i64} {
  func.func @_bn_fused_kernel(%arg0: i32, %arg1: memref<8x32xf32, #tpu.memory_space<vmem>>, %arg2: memref<1x32xf32, #tpu.memory_space<vmem>>, %arg3: memref<1x32xf32, #tpu.memory_space<vmem>>, %arg4: memref<8x32xf32, #tpu.memory_space<vmem>>) attributes {dimension_semantics = [#tpu.dimension_semantics<parallel>], iteration_bounds = array<i64: 1>, scalar_prefetch = 0 : i64, scratch_operands = 0 : i64, tpu.core_type = #tpu.core_type<tc>, window_params = [{transform_indices = @transform_0, window_bounds = array<i64: 8, 32>}, {transform_indices = @transform_1, window_bounds = array<i64: 1, 32>}, {transform_indices = @transform_2, window_bounds = array<i64: 1, 32>}, {transform_indices = @transform_3, window_bounds = array<i64: 8, 32>}]} {
    %c0 = arith.constant 0 : index
    %c0_0 = arith.constant 0 : index
    %0 = vector.load %arg1[%c0, %c0_0] : memref<8x32xf32, #tpu.memory_space<vmem>>, vector<8x32xf32>
    %cst = arith.constant dense<0.000000e+00> : vector<32xf32>
    %1 = vector.multi_reduction <add>, %0, %cst [0] : vector<8x32xf32> to vector<32xf32>
    %2 = vector.shape_cast %1 : vector<32xf32> to vector<1x32xf32>
    %cst_1 = arith.constant 8.000000e+00 : f32
    %3 = vector.broadcast %cst_1 : f32 to vector<1x32xf32>
    %4 = arith.divf %2, %3 : vector<1x32xf32>
    %5 = vector.broadcast %4 : vector<1x32xf32> to vector<8x32xf32>
    %6 = arith.subf %0, %5 : vector<8x32xf32>
    %7 = arith.mulf %6, %6 : vector<8x32xf32>
    %cst_2 = arith.constant dense<0.000000e+00> : vector<32xf32>
    %8 = vector.multi_reduction <add>, %7, %cst_2 [0] : vector<8x32xf32> to vector<32xf32>
    %9 = vector.shape_cast %8 : vector<32xf32> to vector<1x32xf32>
    %cst_3 = arith.constant 8.000000e+00 : f32
    %10 = vector.broadcast %cst_3 : f32 to vector<1x32xf32>
    %11 = arith.divf %9, %10 : vector<1x32xf32>
    %cst_4 = arith.constant 9.99999974E-6 : f32
    %12 = vector.broadcast %cst_4 : f32 to vector<1x32xf32>
    %13 = arith.addf %11, %12 : vector<1x32xf32>
    %14 = math.rsqrt %13 : vector<1x32xf32>
    %c0_5 = arith.constant 0 : index
    %c0_6 = arith.constant 0 : index
    %15 = vector.load %arg2[%c0_5, %c0_6] : memref<1x32xf32, #tpu.memory_space<vmem>>, vector<1x32xf32>
    %16 = arith.mulf %14, %15 : vector<1x32xf32>
    %17 = vector.broadcast %16 : vector<1x32xf32> to vector<8x32xf32>
    %18 = arith.mulf %6, %17 : vector<8x32xf32>
    %c0_7 = arith.constant 0 : index
    %c0_8 = arith.constant 0 : index
    %19 = vector.load %arg3[%c0_7, %c0_8] : memref<1x32xf32, #tpu.memory_space<vmem>>, vector<1x32xf32>
    %20 = vector.broadcast %19 : vector<1x32xf32> to vector<8x32xf32>
    %21 = arith.addf %18, %20 : vector<8x32xf32>
    %c0_9 = arith.constant 0 : index
    %c0_10 = arith.constant 0 : index
    %22 = vector.load %arg4[%c0_9, %c0_10] : memref<8x32xf32, #tpu.memory_space<vmem>>, vector<8x32xf32>
    tpu.vector_store %arg4[%c0_9, %c0_10], %21 {strides = array<i32>} : memref<8x32xf32, #tpu.memory_space<vmem>>, vector<8x32xf32>,
    return
  }
  func.func @transform_0(%arg0: i32) -> (i32, i32) {
    %c0_i32 = arith.constant 0 : i32
    %c0_i32_0 = arith.constant 0 : i32
    return %c0_i32, %arg0 : i32, i32
  }
  func.func @transform_1(%arg0: i32) -> (i32, i32) {
    %c0_i32 = arith.constant 0 : i32
    %c0_i32_0 = arith.constant 0 : i32
    return %c0_i32, %arg0 : i32, i32
  }
  func.func @transform_2(%arg0: i32) -> (i32, i32) {
    %c0_i32 = arith.constant 0 : i32
    %c0_i32_0 = arith.constant 0 : i32
    return %c0_i32, %arg0 : i32, i32
  }
  func.func @transform_3(%arg0: i32) -> (i32, i32) {
    %c0_i32 = arith.constant 0 : i32
    %c0_i32_0 = arith.constant 0 : i32
    return %c0_i32, %arg0 : i32, i32
  }
}

</mosaic_0001>

<bundles_post_ra>
// kernel: tpu_custom_call.1
= control target key start
LH: loop header
LB: loop body
LE: loop exit
PB: predicated region body
PF: predicated region fallthrough
CT: control target
= control target key end

     0   :  { %8 = vsyncpa [#allocation3], 0  ;;  %s189_s0 = inlined_call_operand.hbm [shape: f32[8,32], index: 0, kind: input, shape index: {}]   ;;  %s190_s1 = inlined_call_operand.vmem [shape: f32[1,32], index: 1, kind: input, shape index: {}]   ;;  %s191_s2 = inlined_call_operand.vmem [shape: f32[1,32], index: 2, kind: input, shape index: {}]   ;;  %s192_s3 = inlined_call_operand.hbm [shape: f32[8,32], index: 3, kind: output, shape index: {}]  }
   0x1   :  { %9 = vsyncpa [#allocation4], 0  ;;  %s134_s12 = smov [#allocation2]   ;;  %s86_s16 = scalar_lea.hbm %s189_s0, 128 }
   0x2   :  { %s16_s13 = sshll.u32 %s134_s12, 4  ;;  %p87_p0 = scmp.ne.s32.totalorder %s189_s0, %s86_s16  ;;  %s17_s13 = int_to_ptr.vmem [resolvable:$true] %s16_s13 }
   0x3   :  { %p90_p1 = scmp.lt.u32.totalorder %s86_s16, %s189_s0 }
   0x5   :  { %p92_p2 = pnand %p90_p1, %p87_p0 }
   0x7   :  { %95 = shalt.err (!%p92_p2)
}
   0x8   :  { %s96_s21 = scalar_lea.vmem %s17_s13, 128  ;;  %p101_p4 = scmp.lt.s32.totalorder %s17_s13, %s17_s13 }
   0x9   :  { %p97_p3 = scmp.ne.s32.totalorder %s17_s13, %s96_s21  ;;  %p102_p5 = scmp.lt.s32.totalorder %s96_s21, %s96_s21 }
   0xb   :  { %p103_p6 = por %p102_p5, %p101_p4 }
   0xd   :  { %p104_p7 = pnand %p103_p6, %p97_p3 }
   0xf   :  { %107 = shalt.err (!%p104_p7)
}
  0x10   :  { %19 = dma.hbm_to_vmem [thread:$0]  %s189_s0, 128, %s17_s13, [#allocation3]  }
  0x11   :  { %130 = dma.done.wait [#allocation3], 128  }
  0x12   :  { %131 = vsyncadd [#allocation3], 4294967168  ;;  %vm28_vm0 = vcmask 261120   ;;  %v27_v0 = vld [vmem:[#allocation2] sm:$0xff]  ;;  %v52_v20 = vlaneseq  ;;  %s135_s27 = smov [#allocation5]  }
  0x13   :  { %v29_v1 = vsel %vm28_vm0, %v27_v0, 0.0  ;;  %v50_v22 = vld [vmem:[%s190_s1] sm:$0x1]  ;;  %s72_s28 = sshll.u32 %s135_s27, 4  ;;  %s73_s28 = int_to_ptr.vmem [resolvable:$true] %s72_s28 }
  0x14   :  { %v30_v2 = vrot.slane %v29_v1, 4  ;;  %v53_v21 = vshrl.u32 %v52_v20, 7  ;;  %v81_v27 = vld [vmem:[%s191_s2] ss:$0 sm:$0xff]  ;;  %s108_s29 = scalar_lea.vmem %s73_s28, 128  ;;  %p113_p9 = scmp.lt.s32.totalorder %s73_s28, %s73_s28 }
  0x15   :  { %p109_p8 = scmp.ne.s32.totalorder %s73_s28, %s108_s29  ;;  %p114_p10 = scmp.lt.s32.totalorder %s108_s29, %s108_s29 }
  0x16   :  { %v31_v3 = vadd.f32 %v30_v2, %v29_v1  ;;  %v54_v23 = vsub.s32 0, %v53_v21 }
  0x17   :  { %p115_p11 = por %p114_p10, %p113_p9 }
  0x18   :  { %v32_v4 = vrot.slane %v31_v3, 2 }
  0x19   :  { %p116_p12 = pnand %p115_p11, %p109_p8 }
  0x1a   :  { %v33_v5 = vadd.f32 %v32_v4, %v31_v3 }
  0x1c   :  { %v34_v6 = vrot.slane %v33_v5, 1 }
  0x1e   :  { %v35_v7 = vadd.f32 %v34_v6, %v33_v5 }
  0x20   :  { %v37_v8 = vmul.f32 0.125, %v35_v7 }
  0x22   :  { %v38_v9 = vsub.f32 %v27_v0, %v37_v8 }
  0x24   :  { %v39_v10 = vmul.f32 %v38_v9, %v38_v9 }
  0x26   :  { %v40_v11 = vsel %vm28_vm0, %v39_v10, 0.0 }
  0x27   :  { %v41_v12 = vrot.slane %v40_v11, 4 }
  0x29   :  { %v42_v13 = vadd.f32 %v41_v12, %v40_v11 }
  0x2b   :  { %v43_v14 = vrot.slane %v42_v13, 2 }
  0x2d   :  { %v44_v15 = vadd.f32 %v43_v14, %v42_v13 }
  0x2f   :  { %v45_v16 = vrot.slane %v44_v15, 1 }
  0x31   :  { %v46_v17 = vadd.f32 %v45_v16, %v44_v15 }
  0x33   :  { %v47_v18 = vmul.f32 0.125, %v46_v17 }
  0x35   :  { %v48_v19 = vadd.f32 1e-05, %v47_v18 }
  0x37   :  { %84 = vrsqrt.f32 %v48_v19 }
  0x41   :  { %v85_v24 = vpop.eup %84 }
  0x42   :  { %v51_v25 = vmul.f32 %v85_v24, %v50_v22 }
  0x44   :  { %v55_v26 = vrot.slane %v51_v25, %v54_v23 }
  0x46   :  { %v56_v28 = vmul.f32 %v55_v26, %v38_v9 }
  0x48   :  { %v64_v29 = vadd.f32 %v81_v27, %v56_v28 }
  0x4a   :  { %65 = vst.msk [vmem:[#allocation5] sm:$0xff] %vm28_vm0, %v64_v29 }
  0x4b   :  { %119 = shalt.err (!%p116_p12)
}
  0x4c   :  { %s120_s4 = scalar_lea.hbm %s192_s3, 128 }
  0x4d   :  { %p121_p13 = scmp.ne.s32.totalorder %s192_s3, %s120_s4  ;;  %p124_p0 = scmp.lt.u32.totalorder %s120_s4, %s192_s3 }
  0x4f   :  { %p126_p1 = pnand %p124_p0, %p121_p13 }
  0x51   :  { %129 = shalt.err (!%p126_p1)
}
  0x52   :  { %75 = dma.vmem_to_hbm [thread:$0]  %s73_s28, 128, %s192_s3, [#allocation4]  }
  0x53   :  { %132 = dma.done.wait [#allocation4], 128  }
  0x54   :  { %133 = vsyncadd [#allocation4], 4294967168 }
  0x55   :  { %79 = vsyncpa [#allocation3], 1 }
  0x56   :  { %80 = vsyncpa [#allocation4], 1 }

</bundles_post_ra>
